<compile_context>
chip_gen: v7x
topology: tpu7x:2x2x1
jax: 0.10.0
libtpu: 0.0.40
codegen_flags: <defaults>
</compile_context>

<pallas_src>
import jax
import jax.numpy as jnp
from jax.experimental import pallas as pl
from jax.experimental.pallas import tpu as pltpu


def _round_up(x, m):
    return ((x + m - 1) // m) * m


def skipgram_kernel(focus_ref, ctx_ref, emb_ref, out_ref):
    # focus_ref / ctx_ref : (TILE_B, 1) int32 token ids
    # emb_ref             : (V_pad, E_pad) f32 embedding table (VMEM-resident)
    # out_ref             : (TILE_B, 1) f32 log-sigmoid scores
    tb = focus_ref.shape[0]
    vpad = emb_ref.shape[0]

    # Fused embedding gather as a one-hot matmul on the MXU.
    vocab_iota = jax.lax.broadcasted_iota(jnp.int32, (tb, vpad), 1)
    f_onehot = (focus_ref[...] == vocab_iota).astype(jnp.float32)   # (TILE_B, V_pad)
    c_onehot = (ctx_ref[...] == vocab_iota).astype(jnp.float32)     # (TILE_B, V_pad)

    emb = emb_ref[...]                                              # (V_pad, E_pad)
    embed_focus = jnp.dot(f_onehot, emb, preferred_element_type=jnp.float32)  # (TILE_B, E_pad)
    embed_ctx = jnp.dot(c_onehot, emb, preferred_element_type=jnp.float32)    # (TILE_B, E_pad)

    # score_b = <emb[focus_b], emb[ctx_b]>  (zero pad lanes contribute 0)
    score = jnp.sum(embed_focus * embed_ctx, axis=-1, keepdims=True)          # (TILE_B, 1)

    # Numerically stable logsigmoid(x) = min(x, 0) - log(1 + exp(-|x|))
    out_ref[...] = jnp.minimum(score, 0.0) - jnp.log(1.0 + jnp.exp(-jnp.abs(score)))


def skipgram_forward(focus_ids, context_ids, emb_table):
    """Batched SkipGram.forward.

    focus_ids, context_ids : int32 (B,) token indices.
    emb_table              : f32   (vocab_size, embd_size)  -- nn.Embedding weight.
    Returns f32 (B, 1); row b equals the torch forward output for pair b.
    """
    focus_ids = jnp.asarray(focus_ids, jnp.int32)
    context_ids = jnp.asarray(context_ids, jnp.int32)
    assert focus_ids.ndim == 1 and focus_ids.shape == context_ids.shape
    B = focus_ids.shape[0]
    V, E = emb_table.shape

    # Pad table to sublane/lane-friendly shape (zero rows/cols never affect result).
    V_pad = _round_up(V, 8)
    E_pad = _round_up(E, 128)
    emb_p = jnp.zeros((V_pad, E_pad), jnp.float32).at[:V, :E].set(
        emb_table.astype(jnp.float32))

    # Batch tiling: big tiles once the batch is big enough, else one sublane tile.
    TILE_B = 128 if B >= 128 else 8
    B_pad = _round_up(B, TILE_B)
    focus_p = jnp.zeros((B_pad, 1), jnp.int32).at[:B, 0].set(focus_ids)
    ctx_p = jnp.zeros((B_pad, 1), jnp.int32).at[:B, 0].set(context_ids)

    out = pl.pallas_call(
        skipgram_kernel,
        out_shape=jax.ShapeDtypeStruct((B_pad, 1), jnp.float32),
        grid=(B_pad // TILE_B,),
        in_specs=[
            pl.BlockSpec((TILE_B, 1), lambda i: (i, 0)),      # focus id tile
            pl.BlockSpec((TILE_B, 1), lambda i: (i, 0)),      # context id tile
            pl.BlockSpec((V_pad, E_pad), lambda i: (0, 0)),   # table: same block every step
        ],
        out_specs=pl.BlockSpec((TILE_B, 1), lambda i: (i, 0)),
        compiler_params=pltpu.CompilerParams(
            dimension_semantics=("parallel",),                # batch tiles are independent
        ),
    )(focus_p, ctx_p, emb_p)
    return out[:B]


def reference_forward(focus_ids, context_ids, emb_table):
    """Pure-JAX reference (matches the PyTorch SkipGram.forward, batched)."""
    f = emb_table[focus_ids]                                   # (B, E)
    c = emb_table[context_ids]                                 # (B, E)
    score = jnp.sum(f * c, axis=-1, keepdims=True)             # (B, 1)
    return jax.nn.log_sigmoid(score)


if __name__ == "__main__":
    # Hyperparameters from the PyTorch script: 13 unique words, embd_size = 100.
    vocab_size = 13
    embd_size = 100
    batch = 16  # number of (focus, context) pairs per kernel call

    key = jax.random.PRNGKey(0)
    k_emb, k_f, k_c = jax.random.split(key, 3)

    emb_table = jax.random.normal(k_emb, (vocab_size, embd_size), dtype=jnp.float32)
    focus_ids = jax.random.randint(k_f, (batch,), 0, vocab_size, dtype=jnp.int32)
    context_ids = jax.random.randint(k_c, (batch,), 0, vocab_size, dtype=jnp.int32)

    out = skipgram_forward(focus_ids, context_ids, emb_table)
    out = jax.block_until_ready(out)

    ref = reference_forward(focus_ids, context_ids, emb_table)
    assert out.shape == (batch, 1)
    assert jnp.allclose(out, ref, atol=1e-5, rtol=1e-5), "mismatch vs reference"

    print("KERNEL_OK")
</pallas_src>

<mosaic_0001>
module attributes {stable_mosaic.version = 11 : i64} {
  func.func @skipgram_kernel(%arg0: i32, %arg1: memref<8x1xi32, #tpu.memory_space<vmem>>, %arg2: memref<8x1xi32, #tpu.memory_space<vmem>>, %arg3: memref<16x128xf32, #tpu.memory_space<vmem>>, %arg4: memref<8x1xf32, #tpu.memory_space<vmem>>) attributes {dimension_semantics = [#tpu.dimension_semantics<parallel>], iteration_bounds = array<i64: 2>, scalar_prefetch = 0 : i64, scratch_operands = 0 : i64, tpu.core_type = #tpu.core_type<tc>, window_params = [{transform_indices = @transform_0, window_bounds = array<i64: 8, 1>}, {transform_indices = @transform_1, window_bounds = array<i64: 8, 1>}, {pipeline_mode = #tpu.pipeline_mode<synchronous>, transform_indices = @transform_2, window_bounds = array<i64: 16, 128>}, {transform_indices = @transform_3, window_bounds = array<i64: 8, 1>}]} {
    %0 = tpu.iota {dimensions = array<i32: 1>} : vector<8x16xi32>
    %c0 = arith.constant 0 : index
    %c0_0 = arith.constant 0 : index
    %1 = vector.load %arg1[%c0, %c0_0] : memref<8x1xi32, #tpu.memory_space<vmem>>, vector<8x1xi32>
    %2 = vector.broadcast %1 : vector<8x1xi32> to vector<8x16xi32>
    %3 = arith.cmpi eq, %2, %0 : vector<8x16xi32>
    %4 = arith.extui %3 : vector<8x16xi1> to vector<8x16xi32>
    %5 = arith.sitofp %4 : vector<8x16xi32> to vector<8x16xf32>
    %c0_1 = arith.constant 0 : index
    %c0_2 = arith.constant 0 : index
    %6 = vector.load %arg2[%c0_1, %c0_2] : memref<8x1xi32, #tpu.memory_space<vmem>>, vector<8x1xi32>
    %7 = vector.broadcast %6 : vector<8x1xi32> to vector<8x16xi32>
    %8 = arith.cmpi eq, %7, %0 : vector<8x16xi32>
    %9 = arith.extui %8 : vector<8x16xi1> to vector<8x16xi32>
    %10 = arith.sitofp %9 : vector<8x16xi32> to vector<8x16xf32>
    %c0_3 = arith.constant 0 : index
    %c0_4 = arith.constant 0 : index
    %11 = vector.load %arg3[%c0_3, %c0_4] : memref<16x128xf32, #tpu.memory_space<vmem>>, vector<16x128xf32>
    %cst = arith.constant dense<0.000000e+00> : vector<8x128xf32>
    %12 = tpu.matmul %5, %11, %cst {dimension_numbers = #tpu.dot_dimension_numbers<[1], [0], [0], [1], [0, 0, 1, 1], [], []>} : vector<8x16xf32>, vector<16x128xf32>, vector<8x128xf32> -> vector<8x128xf32>
    %cst_5 = arith.constant dense<0.000000e+00> : vector<8x128xf32>
    %13 = tpu.matmul %10, %11, %cst_5 {dimension_numbers = #tpu.dot_dimension_numbers<[1], [0], [0], [1], [0, 0, 1, 1], [], []>} : vector<8x16xf32>, vector<16x128xf32>, vector<8x128xf32> -> vector<8x128xf32>
    %14 = arith.mulf %12, %13 : vector<8x128xf32>
    %cst_6 = arith.constant dense<0.000000e+00> : vector<8xf32>
    %15 = vector.multi_reduction <add>, %14, %cst_6 [1] : vector<8x128xf32> to vector<8xf32>
    %16 = vector.shape_cast %15 : vector<8xf32> to vector<8x1xf32>
    %cst_7 = arith.constant 0.000000e+00 : f32
    %17 = vector.broadcast %cst_7 : f32 to vector<8x1xf32>
    %18 = arith.minimumf %16, %17 : vector<8x1xf32>
    %19 = math.absf %16 : vector<8x1xf32>
    %cst_8 = arith.constant 0.000000e+00 : f32
    %20 = vector.broadcast %cst_8 : f32 to vector<8x1xf32>
    %21 = arith.subf %20, %19 : vector<8x1xf32>
    %22 = math.exp %21 : vector<8x1xf32>
    %cst_9 = arith.constant 1.000000e+00 : f32
    %23 = vector.broadcast %cst_9 : f32 to vector<8x1xf32>
    %24 = arith.addf %23, %22 : vector<8x1xf32>
    %25 = math.log %24 : vector<8x1xf32>
    %26 = arith.subf %18, %25 : vector<8x1xf32>
    %c0_10 = arith.constant 0 : index
    %c0_11 = arith.constant 0 : index
    %27 = vector.load %arg4[%c0_10, %c0_11] : memref<8x1xf32, #tpu.memory_space<vmem>>, vector<8x1xf32>
    tpu.vector_store %arg4[%c0_10, %c0_11], %26 {strides = array<i32>} : memref<8x1xf32, #tpu.memory_space<vmem>>, vector<8x1xf32>,
    return
  }
  func.func @transform_0(%arg0: i32) -> (i32, i32) {
    %c0_i32 = arith.constant 0 : i32
    %c0_i32_0 = arith.constant 0 : i32
    return %arg0, %c0_i32 : i32, i32
  }
  func.func @transform_1(%arg0: i32) -> (i32, i32) {
    %c0_i32 = arith.constant 0 : i32
    %c0_i32_0 = arith.constant 0 : i32
    return %arg0, %c0_i32 : i32, i32
  }
  func.func @transform_2(%arg0: i32) -> (i32, i32) {
    %c0_i32 = arith.constant 0 : i32
    %c0_i32_0 = arith.constant 0 : i32
    %c0_i32_1 = arith.constant 0 : i32
    return %c0_i32, %c0_i32_0 : i32, i32
  }
  func.func @transform_3(%arg0: i32) -> (i32, i32) {
    %c0_i32 = arith.constant 0 : i32
    %c0_i32_0 = arith.constant 0 : i32
    return %arg0, %c0_i32 : i32, i32
  }
}

</mosaic_0001>

<bundles_post_ra>
// kernel: tpu_custom_call.1
= control target key start
LH: loop header
LB: loop body
LE: loop exit
PB: predicated region body
PF: predicated region fallthrough
CT: control target
= control target key end

     0   :  { %s516_s12 = smov 0   ;;  %s547_s0 = inlined_call_operand.vmem [shape: s32[16,1], index: 0, kind: input, shape index: {}]   ;;  %s548_s1 = inlined_call_operand.vmem [shape: s32[16,1], index: 1, kind: input, shape index: {}]   ;;  %s549_s2 = inlined_call_operand.vmem [shape: f32[16,128], index: 2, kind: input, shape index: {}]   ;;  %s550_s3 = inlined_call_operand.vmem [shape: f32[16,1], index: 3, kind: output, shape index: {}]  }
   0x1 LB: > { %s427_s13 = sadd.s32 4294967295, %s490_s12   ;;  %p431_p0 = scmp.ge.s32.totalorder %s490_s12, 1  ;;  %s490_s12 = sphi %s516_s12, %s13_s12  }
   0x2   : > { %p145_p1 = scmp.lt.s32.totalorder %s490_s12, 3 }
   0x4   : > { %p146_p2 = pnand %p431_p0, %p145_p1 }
   0x5   : > { %p171_p3 = scmp.lt.s32.totalorder (!%p146_p2), %s427_s13, 1  ;;  %v199_v0 = vld [vmem:[%s549_s2] sm:$0xff] (!%p146_p2)  ;;  %v200_v1 = vld [vmem:[%s549_s2 + $0x8] sm:$0xff] (!%p146_p2)  ;;  %v492_v2 = vmov (!%p146_p2), 0   ;;  %v493_v3 = vmov (!%p146_p2), 0.0|0.0   ;;  %vm494_vm0 = vmmov (!%p146_p2), 0   ;;  %v183_v8 = vlaneseq (!%p146_p2) }
   0x6   : > { %149 = sbr.rel (%p146_p2) target bundleno = 542 (0x21e), region = 32  ;;  %479 = vset.pattern.permute.xlu0 (!%p146_p2), %v492_v2  ;;  %461 = vmatprep.subr.bf16.mxu0 (!%p146_p2), %v493_v3  ;;  %v462_v4 = vpack.c.bf16 (!%p146_p2), %v200_v1, %v199_v0  ;;  %v495_v7 = vmov (!%p146_p2), 0.0   ;;  %vm201_vm1 = vcmask (!%p146_p2), 130048   ;;  %vm360_vm4 = vcmask (!%p146_p2), 7168  }
   0x7   : > { %464 = vmatprep.subr.bf16.mxu1 (!%p146_p2), %v493_v3  ;;  %451 = vmatprep.mubr.msk.f32.mxu0 (!%p146_p2), %vm494_vm0, %v495_v7  ;;  %v184_v9 = vand.u32 (!%p146_p2), 127, %v183_v8 }
   0x8   : > { %463 = vmatpush3.bf16.msra.mxu0 (!%p146_p2), %v462_v4  ;;  %466 = vmatpush3.bf16.msra.mxu1 (!%p146_p2), %v462_v4 }
   0x9   : > { %458 = vmatprep.mubr.msk.f32.mxu1 (!%p146_p2), %vm494_vm0, %v495_v7 }
   0xd   : > { %s552_s13 = smov (!%p171_p3, %s427_s13), 1 }
   0xe   : > { %s530_s18 = sshll.u32 %s552_s13, 3 }
   0xf   : > { %s174_s21 = scalar_lea.vmem %s547_s0, %s530_s18  ;;  %s178_s24 = scalar_lea.vmem %s548_s1, %s530_s18 }
  0x10   : > { %v185_v5 = vld [vmem:[%s174_s21] sm:$0xff]  ;;  %s182_s27 = scalar_lea.vmem %s550_s3, %s530_s18 }
  0x11   : > { %187 = vperm.xlu0 %479, %v185_v5   ;;  %v192_v6 = vld [vmem:[%s178_s24] sm:$0xff] }
  0x15   : > { %194 = vperm.xlu0 %479, %v192_v6  }
  0x90   : > { %v188_v10 = vpop.permute.xlu0 %187 }
  0x91   : > { %vm189_vm2 = vcmp.eq.s32.totalorder %v188_v10, %v184_v9 }
  0x92   : > { %v435_v11 = vsel %vm189_vm2, 1.0, %v495_v7 }
  0x93   : > { %452 = vmatmul.mubr.msk.f32.vlgmr.msra.gmra.mrb[0].mxu0 %vm201_vm1, %v435_v11 }
  0x94   : > { %v195_v12 = vpop.permute.xlu0 %194 }
  0x95   : > { %vm196_vm3 = vcmp.eq.s32.totalorder %v195_v12, %v184_v9 }
  0x96   : > { %v436_v13 = vsel %vm196_vm3, 1.0, %v495_v7 }
  0x97   : > { %459 = vmatmul.mubr.msk.f32.vlgmr.msra.gmra.mrb[0].mxu1 %vm201_vm1, %v436_v13 }
 0x166   : > { %v271_v14 = vpop.f32.mrb[0].mxu0 }
 0x167   : > { %v453_v15 = vpop.f32.mrb[1].mxu0 }
 0x16a   : > { %v344_v16 = vpop.f32.mrb[0].mxu1 }
 0x16b   : > { %v460_v17 = vpop.f32.mrb[1].mxu1  ;;  %v348_v18 = vmul.f32 %v344_v16, %v271_v14 }
 0x16d   : > { %349 = vadd.xlane.f32.xlu1 %v348_v18 }
 0x1fa   : > { %v350_v19 = vpop.xlane.xlu1 %349 }
 0x1fb   : > { %v352_v20 = vand.u32 2147483647, %v350_v19  ;;  %v351_v26 = vmin.f32 %v350_v19, 0.0 }
 0x1fd   : > { %v353_v21 = vsub.f32 0.0, %v352_v20 }
 0x1ff   : > { %v354_v22 = vmul.f32 1.442695, %v353_v21 }
 0x201   : > { %480 = vpow2.f32 %v354_v22 }
 0x20b   : > { %v481_v23 = vpop.eup %480 }
 0x20c   : > { %v356_v24 = vadd.f32 1.0, %v481_v23 }
 0x20e   : > { %482 = vlog2.f32 %v356_v24 }
 0x218   : > { %v483_v25 = vpop.eup %482 }
 0x219   : > { %v358_v27 = vmul.f32 0.6931472, %v483_v25 }
 0x21b   : > { %v359_v28 = vsub.f32 %v351_v26, %v358_v27 }
 0x21d   : > { %361 = vst.msk [vmem:[%s182_s27] sm:$0xff] %vm360_vm4, %v359_v28 }
 0x21e PF: > { %s13_s12 = sadd.s32 1, %s490_s12  }
 0x21f   : > { %p10_p4 = scmp.ge.s32.totalorder %s13_s12, 4  }
 0x221   :  { %12 = sbr.rel (!%p10_p4) target bundleno = 1 (0x1), region = 65 }

</bundles_post_ra>
